<compile_context>
chip_gen: v7x
topology: tpu7x:2x2x1
jax: 0.10.0
libtpu: 0.0.40
codegen_flags: <defaults>
</compile_context>

<pallas_src>
import math

import jax
import jax.numpy as jnp
from jax.experimental import pallas as pl
from jax.experimental.pallas import tpu as pltpu

_LANES = 128
_VMEM = pl.BlockSpec(memory_space=pltpu.MemorySpace.VMEM)

# kernel gate slots [i, f, o, g]  <-  PyTorch weight chunks [i, f, g, o]
_GATE_PERM = (0, 1, 3, 2)


def _round_up(n, m=_LANES):
    return ((n + m - 1) // m) * m


# --------------------------------------------------------------------------
# Fused Pallas kernel: all LSTM layers + Linear in one call.
# --------------------------------------------------------------------------
def _make_fused_kernel(num_layers, hp):
    """Ref layout (all VMEM, full-array blocks):

    inputs : x (B, IP) f32, h0 (L, B, HP) f32, c0 (L, B, HP) f32,
             [w_ih_l (IN_l, 4*HP) bf16, w_hh_l (HP, 4*HP) bf16, b_l (1, 4*HP) f32] * L,
             w_lin (HP, OP) bf16, b_lin (1, OP) f32
    outputs: out (B, OP) f32, h_n (L, B, HP) f32, c_n (L, B, HP) f32
    (h0 aliases h_n, c0 aliases c_n; each layer index is read before written.)
    """

    def kernel(x_ref, h0_ref, c0_ref, *args):
        base = 3 * num_layers
        w_lin_ref, b_lin_ref = args[base], args[base + 1]
        out_ref, h_n_ref, c_n_ref = args[base + 2], args[base + 3], args[base + 4]

        layer_in = x_ref[...].astype(jnp.bfloat16)               # (B, IP) bf16 for MXU
        for l in range(num_layers):                              # unrolled (trace time)
            w_ih_ref = args[3 * l]
            w_hh_ref = args[3 * l + 1]
            b_ref = args[3 * l + 2]
            h_prev = h0_ref[l]                                   # (B, HP) f32
            c_prev = c0_ref[l]                                   # (B, HP) f32

            # Two bf16 MXU pushes, f32 accumulation; no data concat buffer.
            gates = (jnp.dot(layer_in, w_ih_ref[...],
                             preferred_element_type=jnp.float32)
                     + jnp.dot(h_prev.astype(jnp.bfloat16), w_hh_ref[...],
                               preferred_element_type=jnp.float32)
                     + b_ref[...])                               # (B, 4*HP) f32

            # Gate order [i, f, o, g]: one sigmoid slab + one tanh slab.
            sig = jax.nn.sigmoid(gates[:, :3 * hp])
            i_g = sig[:, 0 * hp:1 * hp]
            f_g = sig[:, 1 * hp:2 * hp]
            o_g = sig[:, 2 * hp:3 * hp]
            g_g = jnp.tanh(gates[:, 3 * hp:4 * hp])

            c_new = f_g * c_prev + i_g * g_g                     # f32 state
            h_new = o_g * jnp.tanh(c_new)

            h_n_ref[l] = h_new                                   # lane-dense stores
            c_n_ref[l] = c_new
            layer_in = h_new.astype(jnp.bfloat16)                # stays on-chip

        out = jnp.dot(layer_in, w_lin_ref[...],
                      preferred_element_type=jnp.float32) + b_lin_ref[...]
        out_ref[...] = out                                       # lane-dense store

    return kernel


# --------------------------------------------------------------------------
# Parameter init (mirrors nn.LSTM / nn.Linear shapes).  Returns
#   kernel_params: lane-padded, gate-permuted, bf16 weights for the fused kernel
#   ref_params   : raw f32 pre-transposed weights for the pure-JAX reference
# --------------------------------------------------------------------------
def lstm_decoder_init(key, input_size, hidden_size, num_layers=1):
    hp = _round_up(hidden_size)
    ip = _round_up(input_size)
    k = 1.0 / math.sqrt(hidden_size)

    w_ihs, w_hhs, biases, ref_layers = [], [], [], []
    for layer in range(num_layers):
        in_sz = input_size if layer == 0 else hidden_size
        in_pad = ip if layer == 0 else hp
        key, k1, k2, k3, k4 = jax.random.split(key, 5)
        w_ih = jax.random.uniform(k1, (4 * hidden_size, in_sz), jnp.float32, -k, k)
        w_hh = jax.random.uniform(k2, (4 * hidden_size, hidden_size), jnp.float32, -k, k)
        b_ih = jax.random.uniform(k3, (4 * hidden_size,), jnp.float32, -k, k)
        b_hh = jax.random.uniform(k4, (4 * hidden_size,), jnp.float32, -k, k)

        w_ih_t = w_ih.T                      # (in_sz, 4H)   PyTorch i,f,g,o order
        w_hh_t = w_hh.T                      # (H, 4H)
        b_sum = b_ih + b_hh                  # (4H,)

        # Pad each gate block to HP lanes and permute chunks to [i, f, o, g].
        w_ih_pad = jnp.zeros((in_pad, 4 * hp), jnp.float32)
        w_hh_pad = jnp.zeros((hp, 4 * hp), jnp.float32)
        b_pad = jnp.zeros((1, 4 * hp), jnp.float32)
        for t, s in enumerate(_GATE_PERM):
            cs, ce = s * hidden_size, (s + 1) * hidden_size
            w_ih_pad = w_ih_pad.at[:in_sz, t * hp:t * hp + hidden_size].set(w_ih_t[:, cs:ce])
            w_hh_pad = w_hh_pad.at[:hidden_size, t * hp:t * hp + hidden_size].set(w_hh_t[:, cs:ce])
            b_pad = b_pad.at[0, t * hp:t * hp + hidden_size].set(b_sum[cs:ce])

        w_ihs.append(w_ih_pad.astype(jnp.bfloat16))
        w_hhs.append(w_hh_pad.astype(jnp.bfloat16))
        biases.append(b_pad)                 # bias stays f32
        ref_layers.append({"w_ih_t": w_ih_t, "w_hh_t": w_hh_t,
                           "b": b_sum.reshape(1, -1)})

    key, k5, k6 = jax.random.split(key, 3)
    w_lin = jax.random.uniform(k5, (input_size, hidden_size), jnp.float32, -k, k)
    b_lin = jax.random.uniform(k6, (input_size,), jnp.float32, -k, k)
    w_lin_pad = jnp.zeros((hp, ip), jnp.float32).at[:hidden_size, :input_size].set(w_lin.T)
    b_lin_pad = jnp.zeros((1, ip), jnp.float32).at[0, :input_size].set(b_lin)

    kernel_params = {"w_ih": tuple(w_ihs), "w_hh": tuple(w_hhs), "b": tuple(biases),
                     "w_lin": w_lin_pad.astype(jnp.bfloat16), "b_lin": b_lin_pad}
    ref_params = {"layers": ref_layers,
                  "w_lin_t": w_lin.T, "b_lin": b_lin.reshape(1, -1)}
    return kernel_params, ref_params


# --------------------------------------------------------------------------
# lstm_decoder forward — one jit, one pallas_call, state aliased in place.
# --------------------------------------------------------------------------
@jax.jit
def lstm_decoder_forward(params, x_input, encoder_hidden_states):
    """
    x_input:               (batch, input_size)
    encoder_hidden_states: (h0, c0), each (num_layers, batch, hidden_size)
    returns (output (batch, input_size), (h_n, c_n))
    """
    h0, c0 = encoder_hidden_states
    num_layers, batch, hidden = h0.shape
    input_size = x_input.shape[-1]

    hp = params["w_hh"][0].shape[0]              # padded hidden width
    in_pad0 = params["w_ih"][0].shape[0]         # padded input width (layer 0)
    out_pad = params["w_lin"].shape[1]           # padded output width

    # Cheap XLA pads (zero pad keeps padded lanes exactly zero through the LSTM).
    x_pad = jnp.pad(x_input, ((0, 0), (0, in_pad0 - input_size)))
    h0_pad = jnp.pad(h0, ((0, 0), (0, 0), (0, hp - hidden)))
    c0_pad = jnp.pad(c0, ((0, 0), (0, 0), (0, hp - hidden)))

    flat_weights = []
    for l in range(num_layers):
        flat_weights += [params["w_ih"][l], params["w_hh"][l], params["b"][l]]

    operands = (x_pad, h0_pad, c0_pad, *flat_weights,
                params["w_lin"], params["b_lin"])

    out_shape = (
        jax.ShapeDtypeStruct((batch, out_pad), jnp.float32),
        jax.ShapeDtypeStruct((num_layers, batch, hp), jnp.float32),
        jax.ShapeDtypeStruct((num_layers, batch, hp), jnp.float32),
    )

    # VMEM-budget guard: scale the scoped limit with the actual operand footprint
    # (important once hidden_size grows, esp. on v7x's 64 MiB physical VMEM).
    total_bytes = sum(math.prod(a.shape) * a.dtype.itemsize for a in operands)
    total_bytes += sum(math.prod(s.shape) * 4 for s in out_shape)
    vmem_limit = int(min(64 << 20, max(32 << 20, 2 * total_bytes + (4 << 20))))

    kernel = _make_fused_kernel(num_layers, hp)
    out_p, h_n_p, c_n_p = pl.pallas_call(
        kernel,
        out_shape=out_shape,
        in_specs=[_VMEM] * len(operands),
        out_specs=(_VMEM, _VMEM, _VMEM),
        # h0_pad -> h_n, c0_pad -> c_n updated in place (no fresh output buffers);
        # each layer index is read before it is written, so aliasing is safe.
        input_output_aliases={1: 1, 2: 2},
        compiler_params=pltpu.CompilerParams(vmem_limit_bytes=vmem_limit),
    )(*operands)

    output = out_p[:, :input_size]
    h_n = h_n_p[:, :, :hidden]
    c_n = c_n_p[:, :, :hidden]
    return output, (h_n, c_n)


# --------------------------------------------------------------------------
# Pure-JAX f32 reference (unpadded, PyTorch gate order) for correctness check.
# --------------------------------------------------------------------------
def _reference_forward(ref_params, x, hidden_states):
    h0, c0 = hidden_states
    H = h0.shape[-1]
    layer_in = x
    h_out, c_out = [], []
    for idx, p in enumerate(ref_params["layers"]):
        gates = layer_in @ p["w_ih_t"] + h0[idx] @ p["w_hh_t"] + p["b"]
        i = jax.nn.sigmoid(gates[:, :H])
        f = jax.nn.sigmoid(gates[:, H:2 * H])
        g = jnp.tanh(gates[:, 2 * H:3 * H])
        o = jax.nn.sigmoid(gates[:, 3 * H:])
        c1 = f * c0[idx] + i * g
        h1 = o * jnp.tanh(c1)
        h_out.append(h1)
        c_out.append(c1)
        layer_in = h1
    out = layer_in @ ref_params["w_lin_t"] + ref_params["b_lin"]
    return out, (jnp.stack(h_out), jnp.stack(c_out))


# --------------------------------------------------------------------------
if __name__ == "__main__":
    key = jax.random.PRNGKey(0)
    batch, input_size, hidden_size, num_layers = 8, 16, 32, 2

    kp, kx, kh, kc = jax.random.split(key, 4)
    params, ref_params = lstm_decoder_init(kp, input_size, hidden_size, num_layers)

    x_input = jax.random.normal(kx, (batch, input_size), jnp.float32)
    h0 = jax.random.normal(kh, (num_layers, batch, hidden_size), jnp.float32)
    c0 = jax.random.normal(kc, (num_layers, batch, hidden_size), jnp.float32)

    output, (h_n, c_n) = lstm_decoder_forward(params, x_input, (h0, c0))
    jax.block_until_ready((output, h_n, c_n))

    ref_out, (ref_h, ref_c) = _reference_forward(ref_params, x_input, (h0, c0))
    # bf16 weights / bf16 MXU inputs with f32 accumulation -> loosened tolerance
    # vs. the pure-f32 reference (state and gate math remain f32 in the kernel).
    assert jnp.allclose(output, ref_out, atol=2e-2), "output mismatch"
    assert jnp.allclose(h_n, ref_h, atol=2e-2), "h_n mismatch"
    assert jnp.allclose(c_n, ref_c, atol=2e-2), "c_n mismatch"

    print("KERNEL_OK")
</pallas_src>

<mosaic_0001>
module attributes {stable_mosaic.version = 11 : i64} {
  func.func @kernel(%arg0: memref<8x128xf32, #tpu.memory_space<vmem>>, %arg1: memref<2x8x128xf32, #tpu.memory_space<vmem>>, %arg2: memref<2x8x128xf32, #tpu.memory_space<vmem>>, %arg3: memref<128x512xbf16, #tpu.memory_space<vmem>>, %arg4: memref<128x512xbf16, #tpu.memory_space<vmem>>, %arg5: memref<1x512xf32, #tpu.memory_space<vmem>>, %arg6: memref<128x512xbf16, #tpu.memory_space<vmem>>, %arg7: memref<128x512xbf16, #tpu.memory_space<vmem>>, %arg8: memref<1x512xf32, #tpu.memory_space<vmem>>, %arg9: memref<128x128xbf16, #tpu.memory_space<vmem>>, %arg10: memref<1x128xf32, #tpu.memory_space<vmem>>, %arg11: memref<8x128xf32, #tpu.memory_space<vmem>>, %arg12: memref<2x8x128xf32, #tpu.memory_space<vmem>>, %arg13: memref<2x8x128xf32, #tpu.memory_space<vmem>>) attributes {dimension_semantics = [], scalar_prefetch = 0 : i64, scratch_operands = 0 : i64, tpu.core_type = #tpu.core_type<tc>} {
    %c0 = arith.constant 0 : index
    %c0_0 = arith.constant 0 : index
    %0 = vector.load %arg0[%c0, %c0_0] : memref<8x128xf32, #tpu.memory_space<vmem>>, vector<8x128xf32>
    %1 = arith.truncf %0 : vector<8x128xf32> to vector<8x128xbf16>
    %c0_1 = arith.constant 0 : index
    %c0_2 = arith.constant 0 : index
    %c0_3 = arith.constant 0 : index
    %2 = vector.load %arg1[%c0_1, %c0_2, %c0_3] : memref<2x8x128xf32, #tpu.memory_space<vmem>>, vector<1x8x128xf32>
    %3 = vector.shape_cast %2 : vector<1x8x128xf32> to vector<8x128xf32>
    %c0_4 = arith.constant 0 : index
    %c0_5 = arith.constant 0 : index
    %c0_6 = arith.constant 0 : index
    %4 = vector.load %arg2[%c0_4, %c0_5, %c0_6] : memref<2x8x128xf32, #tpu.memory_space<vmem>>, vector<1x8x128xf32>
    %5 = vector.shape_cast %4 : vector<1x8x128xf32> to vector<8x128xf32>
    %c0_7 = arith.constant 0 : index
    %c0_8 = arith.constant 0 : index
    %6 = vector.load %arg3[%c0_7, %c0_8] : memref<128x512xbf16, #tpu.memory_space<vmem>>, vector<128x512xbf16>
    %cst = arith.constant dense<0.000000e+00> : vector<8x512xf32>
    %7 = tpu.matmul %1, %6, %cst {dimension_numbers = #tpu.dot_dimension_numbers<[1], [0], [0], [1], [0, 0, 1, 1], [], []>} : vector<8x128xbf16>, vector<128x512xbf16>, vector<8x512xf32> -> vector<8x512xf32>
    %8 = arith.truncf %3 : vector<8x128xf32> to vector<8x128xbf16>
    %c0_9 = arith.constant 0 : index
    %c0_10 = arith.constant 0 : index
    %9 = vector.load %arg4[%c0_9, %c0_10] : memref<128x512xbf16, #tpu.memory_space<vmem>>, vector<128x512xbf16>
    %cst_11 = arith.constant dense<0.000000e+00> : vector<8x512xf32>
    %10 = tpu.matmul %8, %9, %cst_11 {dimension_numbers = #tpu.dot_dimension_numbers<[1], [0], [0], [1], [0, 0, 1, 1], [], []>} : vector<8x128xbf16>, vector<128x512xbf16>, vector<8x512xf32> -> vector<8x512xf32>
    %11 = arith.addf %7, %10 : vector<8x512xf32>
    %c0_12 = arith.constant 0 : index
    %c0_13 = arith.constant 0 : index
    %12 = vector.load %arg5[%c0_12, %c0_13] : memref<1x512xf32, #tpu.memory_space<vmem>>, vector<1x512xf32>
    %13 = vector.broadcast %12 : vector<1x512xf32> to vector<8x512xf32>
    %14 = arith.addf %11, %13 : vector<8x512xf32>
    %15 = vector.extract_strided_slice %14 {offsets = [0, 0], sizes = [8, 384], strides = [1, 1]} : vector<8x512xf32> to vector<8x384xf32>
    %16 = arith.negf %15 : vector<8x384xf32>
    %17 = math.exp %16 : vector<8x384xf32>
    %cst_14 = arith.constant 1.000000e+00 : f32
    %18 = vector.broadcast %cst_14 : f32 to vector<8x384xf32>
    %19 = arith.addf %18, %17 : vector<8x384xf32>
    %20 = arith.divf %18, %19 : vector<8x384xf32>
    %21 = vector.extract_strided_slice %20 {offsets = [0, 0], sizes = [8, 128], strides = [1, 1]} : vector<8x384xf32> to vector<8x128xf32>
    %22 = vector.extract_strided_slice %20 {offsets = [0, 128], sizes = [8, 128], strides = [1, 1]} : vector<8x384xf32> to vector<8x128xf32>
    %23 = vector.extract_strided_slice %20 {offsets = [0, 256], sizes = [8, 128], strides = [1, 1]} : vector<8x384xf32> to vector<8x128xf32>
    %24 = vector.extract_strided_slice %14 {offsets = [0, 384], sizes = [8, 128], strides = [1, 1]} : vector<8x512xf32> to vector<8x128xf32>
    %25 = math.tanh %24 : vector<8x128xf32>
    %26 = arith.mulf %22, %5 : vector<8x128xf32>
    %27 = arith.mulf %21, %25 : vector<8x128xf32>
    %28 = arith.addf %26, %27 : vector<8x128xf32>
    %29 = math.tanh %28 : vector<8x128xf32>
    %30 = arith.mulf %23, %29 : vector<8x128xf32>
    %c0_15 = arith.constant 0 : index
    %c0_16 = arith.constant 0 : index
    %c0_17 = arith.constant 0 : index
    %31 = vector.load %arg12[%c0_15, %c0_16, %c0_17] : memref<2x8x128xf32, #tpu.memory_space<vmem>>, vector<1x8x128xf32>
    %32 = vector.shape_cast %31 : vector<1x8x128xf32> to vector<8x128xf32>
    %33 = vector.shape_cast %30 : vector<8x128xf32> to vector<1x8x128xf32>
    tpu.vector_store %arg12[%c0_15, %c0_16, %c0_17], %33 {strides = array<i32>} : memref<2x8x128xf32, #tpu.memory_space<vmem>>, vector<1x8x128xf32>,
    %c0_18 = arith.constant 0 : index
    %c0_19 = arith.constant 0 : index
    %c0_20 = arith.constant 0 : index
    %34 = vector.load %arg13[%c0_18, %c0_19, %c0_20] : memref<2x8x128xf32, #tpu.memory_space<vmem>>, vector<1x8x128xf32>
    %35 = vector.shape_cast %34 : vector<1x8x128xf32> to vector<8x128xf32>
    %36 = vector.shape_cast %28 : vector<8x128xf32> to vector<1x8x128xf32>
    tpu.vector_store %arg13[%c0_18, %c0_19, %c0_20], %36 {strides = array<i32>} : memref<2x8x128xf32, #tpu.memory_space<vmem>>, vector<1x8x128xf32>,
    %37 = arith.truncf %30 : vector<8x128xf32> to vector<8x128xbf16>
    %c1 = arith.constant 1 : index
    %c0_21 = arith.constant 0 : index
    %c0_22 = arith.constant 0 : index
    %38 = vector.load %arg1[%c1, %c0_21, %c0_22] : memref<2x8x128xf32, #tpu.memory_space<vmem>>, vector<1x8x128xf32>
    %39 = vector.shape_cast %38 : vector<1x8x128xf32> to vector<8x128xf32>
    %c1_23 = arith.constant 1 : index
    %c0_24 = arith.constant 0 : index
    %c0_25 = arith.constant 0 : index
    %40 = vector.load %arg2[%c1_23, %c0_24, %c0_25] : memref<2x8x128xf32, #tpu.memory_space<vmem>>, vector<1x8x128xf32>
    %41 = vector.shape_cast %40 : vector<1x8x128xf32> to vector<8x128xf32>
    %c0_26 = arith.constant 0 : index
    %c0_27 = arith.constant 0 : index
    %42 = vector.load %arg6[%c0_26, %c0_27] : memref<128x512xbf16, #tpu.memory_space<vmem>>, vector<128x512xbf16>
    %cst_28 = arith.constant dense<0.000000e+00> : vector<8x512xf32>
    %43 = tpu.matmul %37, %42, %cst_28 {dimension_numbers = #tpu.dot_dimension_numbers<[1], [0], [0], [1], [0, 0, 1, 1], [], []>} : vector<8x128xbf16>, vector<128x512xbf16>, vector<8x512xf32> -> vector<8x512xf32>
    %44 = arith.truncf %39 : vector<8x128xf32> to vector<8x128xbf16>
    %c0_29 = arith.constant 0 : index
    %c0_30 = arith.constant 0 : index
    %45 = vector.load %arg7[%c0_29, %c0_30] : memref<128x512xbf16, #tpu.memory_space<vmem>>, vector<128x512xbf16>
    %cst_31 = arith.constant dense<0.000000e+00> : vector<8x512xf32>
    %46 = tpu.matmul %44, %45, %cst_31 {dimension_numbers = #tpu.dot_dimension_numbers<[1], [0], [0], [1], [0, 0, 1, 1], [], []>} : vector<8x128xbf16>, vector<128x512xbf16>, vector<8x512xf32> -> vector<8x512xf32>
    %47 = arith.addf %43, %46 : vector<8x512xf32>
    %c0_32 = arith.constant 0 : index
    %c0_33 = arith.constant 0 : index
    %48 = vector.load %arg8[%c0_32, %c0_33] : memref<1x512xf32, #tpu.memory_space<vmem>>, vector<1x512xf32>
    %49 = vector.broadcast %48 : vector<1x512xf32> to vector<8x512xf32>
    %50 = arith.addf %47, %49 : vector<8x512xf32>
    %51 = vector.extract_strided_slice %50 {offsets = [0, 0], sizes = [8, 384], strides = [1, 1]} : vector<8x512xf32> to vector<8x384xf32>
    %52 = arith.negf %51 : vector<8x384xf32>
    %53 = math.exp %52 : vector<8x384xf32>
    %cst_34 = arith.constant 1.000000e+00 : f32
    %54 = vector.broadcast %cst_34 : f32 to vector<8x384xf32>
    %55 = arith.addf %54, %53 : vector<8x384xf32>
    %56 = arith.divf %54, %55 : vector<8x384xf32>
    %57 = vector.extract_strided_slice %56 {offsets = [0, 0], sizes = [8, 128], strides = [1, 1]} : vector<8x384xf32> to vector<8x128xf32>
    %58 = vector.extract_strided_slice %56 {offsets = [0, 128], sizes = [8, 128], strides = [1, 1]} : vector<8x384xf32> to vector<8x128xf32>
    %59 = vector.extract_strided_slice %56 {offsets = [0, 256], sizes = [8, 128], strides = [1, 1]} : vector<8x384xf32> to vector<8x128xf32>
    %60 = vector.extract_strided_slice %50 {offsets = [0, 384], sizes = [8, 128], strides = [1, 1]} : vector<8x512xf32> to vector<8x128xf32>
    %61 = math.tanh %60 : vector<8x128xf32>
    %62 = arith.mulf %58, %41 : vector<8x128xf32>
    %63 = arith.mulf %57, %61 : vector<8x128xf32>
    %64 = arith.addf %62, %63 : vector<8x128xf32>
    %65 = math.tanh %64 : vector<8x128xf32>
    %66 = arith.mulf %59, %65 : vector<8x128xf32>
    %c1_35 = arith.constant 1 : index
    %c0_36 = arith.constant 0 : index
    %c0_37 = arith.constant 0 : index
    %67 = vector.load %arg12[%c1_35, %c0_36, %c0_37] : memref<2x8x128xf32, #tpu.memory_space<vmem>>, vector<1x8x128xf32>
    %68 = vector.shape_cast %67 : vector<1x8x128xf32> to vector<8x128xf32>
    %69 = vector.shape_cast %66 : vector<8x128xf32> to vector<1x8x128xf32>
    tpu.vector_store %arg12[%c1_35, %c0_36, %c0_37], %69 {strides = array<i32>} : memref<2x8x128xf32, #tpu.memory_space<vmem>>, vector<1x8x128xf32>,
    %c1_38 = arith.constant 1 : index
    %c0_39 = arith.constant 0 : index
    %c0_40 = arith.constant 0 : index
    %70 = vector.load %arg13[%c1_38, %c0_39, %c0_40] : memref<2x8x128xf32, #tpu.memory_space<vmem>>, vector<1x8x128xf32>
    %71 = vector.shape_cast %70 : vector<1x8x128xf32> to vector<8x128xf32>
    %72 = vector.shape_cast %64 : vector<8x128xf32> to vector<1x8x128xf32>
    tpu.vector_store %arg13[%c1_38, %c0_39, %c0_40], %72 {strides = array<i32>} : memref<2x8x128xf32, #tpu.memory_space<vmem>>, vector<1x8x128xf32>,
    %73 = arith.truncf %66 : vector<8x128xf32> to vector<8x128xbf16>
    %c0_41 = arith.constant 0 : index
    %c0_42 = arith.constant 0 : index
    %74 = vector.load %arg9[%c0_41, %c0_42] : memref<128x128xbf16, #tpu.memory_space<vmem>>, vector<128x128xbf16>
    %cst_43 = arith.constant dense<0.000000e+00> : vector<8x128xf32>
    %75 = tpu.matmul %73, %74, %cst_43 {dimension_numbers = #tpu.dot_dimension_numbers<[1], [0], [0], [1], [0, 0, 1, 1], [], []>} : vector<8x128xbf16>, vector<128x128xbf16>, vector<8x128xf32> -> vector<8x128xf32>
    %c0_44 = arith.constant 0 : index
    %c0_45 = arith.constant 0 : index
    %76 = vector.load %arg10[%c0_44, %c0_45] : memref<1x128xf32, #tpu.memory_space<vmem>>, vector<1x128xf32>
    %77 = vector.broadcast %76 : vector<1x128xf32> to vector<8x128xf32>
    %78 = arith.addf %75, %77 : vector<8x128xf32>
    %c0_46 = arith.constant 0 : index
    %c0_47 = arith.constant 0 : index
    %79 = vector.load %arg11[%c0_46, %c0_47] : memref<8x128xf32, #tpu.memory_space<vmem>>, vector<8x128xf32>
    tpu.vector_store %arg11[%c0_46, %c0_47], %78 {strides = array<i32>} : memref<8x128xf32, #tpu.memory_space<vmem>>, vector<8x128xf32>,
    return
  }
}

</mosaic_0001>

<bundles_post_ra>
// kernel: lstm_decoder_forward.1
= control target key start
LH: loop header
LB: loop body
LE: loop exit
PB: predicated region body
PF: predicated region fallthrough
CT: control target
= control target key end

     0   :  { %19 = vsyncpa [#allocation3], 0  ;;  %s2241_s0 = inlined_call_operand.vmem [shape: f32[8,128], index: 0, kind: input, shape index: {}]   ;;  %s2242_s1 = inlined_call_operand.vmem [shape: f32[2,8,128], index: 1, kind: input, shape index: {}, may-alias: {1,12}]   ;;  %s2243_s2 = inlined_call_operand.vmem [shape: f32[2,8,128], index: 2, kind: input, shape index: {}, may-alias: {2,13}]   ;;  %s2244_s3 = inlined_call_operand.hbm [shape: bf16[128,512], index: 3, kind: input, shape index: {}]   ;;  %s2245_s4 = inlined_call_operand.hbm [shape: bf16[128,512], index: 4, kind: input, shape index: {}]   ;;  %s2246_s5 = inlined_call_operand.vmem [shape: f32[1,512], index: 5, kind: input, shape index: {}]   ;;  %s2247_s6 = inlined_call_operand.hbm [shape: bf16[128,512], index: 6, kind: input, shape index: {}]   ;;  %s2248_s7 = inlined_call_operand.hbm [shape: bf16[128,512], index: 7, kind: input, shape index: {}]   ;;  %s2249_s8 = inlined_call_operand.vmem [shape: f32[1,512], index: 8, kind: input, shape index: {}]   ;;  %s2250_s9 = inlined_call_operand.vmem [shape: bf16[128,128], index: 9, kind: input, shape index: {}]   ;;  %s2251_s10 = inlined_call_operand.vmem [shape: f32[1,128], index: 10, kind: input, shape index: {}]   ;;  %s2252_s11 = inlined_call_operand.hbm [shape: f32[8,128], index: 11, kind: output, shape index: {0}]   ;;  %s2253_s12 = inlined_call_operand.vmem [shape: f32[2,8,128], index: 12, kind: output, shape index: {1}, may-alias: {1,12}]   ;;  %s2254_s13 = inlined_call_operand.vmem [shape: f32[2,8,128], index: 13, kind: output, shape index: {2}, may-alias: {2,13}]  }
   0x1   :  { %20 = vsyncpa [#allocation6], 0 }
   0x2   :  { %21 = vsyncpa [#allocation9], 0 }
   0x3   :  { %22 = vsyncpa [#allocation4], 0  ;;  %s1985_s25 = smov [#allocation5]   ;;  %s1986_s27 = smov [#allocation2]  }
   0x4   :  { %s46_s26 = sshll.u32 %s1985_s25, 4  ;;  %s34_s28 = sshll.u32 %s1986_s27, 4  ;;  %s47_s26 = int_to_ptr.vmem [resolvable:$true] %s46_s26  ;;  %s2065_s28 = int_to_ptr.vmem [resolvable:$true] %s34_s28 }
   0x5   :  { %s1867_s14 = scalar_lea.hbm %s2245_s4, 4096 }
   0x6   :  { %p1868_p0 = scmp.ne.s32.totalorder %s2245_s4, %s1867_s14  ;;  %p1871_p1 = scmp.lt.u32.totalorder %s1867_s14, %s2245_s4 }
   0x8   :  { %p1873_p2 = pnand %p1871_p1, %p1868_p0 }
   0xa   :  { %1876 = shalt.err (!%p1873_p2)
}
   0xb   :  { %s1877_s19 = scalar_lea.vmem %s47_s26, 4096  ;;  %p1882_p4 = scmp.lt.s32.totalorder %s47_s26, %s47_s26 }
   0xc   :  { %p1878_p3 = scmp.ne.s32.totalorder %s47_s26, %s1877_s19  ;;  %p1883_p5 = scmp.lt.s32.totalorder %s1877_s19, %s1877_s19 }
   0xe   :  { %p1884_p6 = por %p1883_p5, %p1882_p4 }
  0x10   :  { %p1885_p7 = pnand %p1884_p6, %p1878_p3 }
  0x12   :  { %1888 = shalt.err (!%p1885_p7)
}
  0x13   :  { %s1987_s20 = smov 256   ;;  %s1988_s21 = smov 16  }
  0x14   :  { %52 = dma.hbm_to_vmem [thread:$0]  %s2245_s4, 4096, %s47_s26, [#allocation6], %s1987_s20, %s1987_s20, %s1988_s21  }
  0x15   :  { %s1889_s27 = scalar_lea.hbm %s2244_s3, 4096 }
  0x16   :  { %p1890_p8 = scmp.ne.s32.totalorder %s2244_s3, %s1889_s27  ;;  %p1893_p9 = scmp.lt.u32.totalorder %s1889_s27, %s2244_s3 }
  0x18   :  { %p1895_p10 = pnand %p1893_p9, %p1890_p8 }
  0x1a   :  { %1898 = shalt.err (!%p1895_p10)
}
  0x1b   :  { %s1899_s16 = scalar_lea.vmem %s2065_s28, 4096  ;;  %p1904_p12 = scmp.lt.s32.totalorder %s2065_s28, %s2065_s28 }
  0x1c   :  { %p1900_p11 = scmp.ne.s32.totalorder %s2065_s28, %s1899_s16  ;;  %p1905_p13 = scmp.lt.s32.totalorder %s1899_s16, %s1899_s16 }
  0x1e   :  { %p1906_p0 = por %p1905_p13, %p1904_p12 }
  0x20   :  { %p1907_p1 = pnand %p1906_p0, %p1900_p11 }
  0x22   :  { %1910 = shalt.err (!%p1907_p1)
}
  0x23   :  { %40 = dma.hbm_to_vmem [thread:$0]  %s2244_s3, 4096, %s2065_s28, [#allocation3], %s1987_s20, %s1987_s20, %s1988_s21  }
  0x24   :  { %s1989_s17 = smov [#allocation7]   ;;  %s1990_s19 = smov [#allocation8]  }
  0x25   :  { %s60_s18 = sshll.u32 %s1989_s17, 4  ;;  %s72_s22 = sshll.u32 %s1990_s19, 4  ;;  %s61_s18 = int_to_ptr.vmem [resolvable:$true] %s60_s18  ;;  %s2102_s22 = int_to_ptr.vmem [resolvable:$true] %s72_s22 }
  0x26   :  { %s1911_s25 = scalar_lea.hbm %s2247_s6, 4096 }
  0x27   :  { %p1912_p2 = scmp.ne.s32.totalorder %s2247_s6, %s1911_s25  ;;  %p1915_p3 = scmp.lt.u32.totalorder %s1911_s25, %s2247_s6 }
  0x29   :  { %p1917_p4 = pnand %p1915_p3, %p1912_p2 }
  0x2b   :  { %1920 = shalt.err (!%p1917_p4)
}
  0x2c   :  { %s1921_s3 = scalar_lea.vmem %s61_s18, 4096  ;;  %p1926_p6 = scmp.lt.s32.totalorder %s61_s18, %s61_s18 }
  0x2d   :  { %p1922_p5 = scmp.ne.s32.totalorder %s61_s18, %s1921_s3  ;;  %p1927_p7 = scmp.lt.s32.totalorder %s1921_s3, %s1921_s3 }
  0x2f   :  { %p1928_p8 = por %p1927_p7, %p1926_p6 }
  0x31   :  { %p1929_p9 = pnand %p1928_p8, %p1922_p5 }
  0x33   :  { %1932 = shalt.err (!%p1929_p9)
}
  0x34   :  { %66 = dma.hbm_to_vmem [thread:$0]  %s2247_s6, 4096, %s61_s18, [#allocation6], %s1987_s20, %s1987_s20, %s1988_s21  }
  0x35   :  { %s1933_s26 = scalar_lea.hbm %s2248_s7, 4096 }
  0x36   :  { %p1934_p10 = scmp.ne.s32.totalorder %s2248_s7, %s1933_s26  ;;  %p1937_p11 = scmp.lt.u32.totalorder %s1933_s26, %s2248_s7 }
  0x38   :  { %p1939_p12 = pnand %p1937_p11, %p1934_p10 }
  0x3a   :  { %1942 = shalt.err (!%p1939_p12)
}
  0x3b   :  { %s1943_s25 = scalar_lea.vmem %s2102_s22, 4096  ;;  %p1948_p0 = scmp.lt.s32.totalorder %s2102_s22, %s2102_s22 }
  0x3c   :  { %p1944_p13 = scmp.ne.s32.totalorder %s2102_s22, %s1943_s25  ;;  %p1949_p1 = scmp.lt.s32.totalorder %s1943_s25, %s1943_s25 }
  0x3e   :  { %p1950_p2 = por %p1949_p1, %p1948_p0 }
  0x40   :  { %p1951_p3 = pnand %p1950_p2, %p1944_p13 }
  0x42   :  { %1954 = shalt.err (!%p1951_p3)
}
  0x43   :  { %78 = dma.hbm_to_vmem [thread:$0]  %s2248_s7, 4096, %s2102_s22, [#allocation9], %s1987_s20, %s1987_s20, %s1988_s21  }
  0x44   :  { %1977 = dma.done.wait [#allocation3], 4096  }
  0x45   :  { %1978 = vsyncadd [#allocation3], 4294963200 }
  0x46   :  { %1979 = dma.done.wait [#allocation6], 8192  }
  0x47   :  { %1980 = vsyncadd [#allocation6], 4294959104 }
  0x48   :  { %1981 = dma.done.wait [#allocation9], 4096  }
  0x49   :  { %1982 = vsyncadd [#allocation9], 4294963200  ;;  %v1991_v0 = vmov 0   ;;  %v1635_v1 = vld [vmem:[#allocation5 + $0x4] ss:$16 sps:$4 sm:$0xff]   ;;  %vm1993_vm0 = vmmov 0  }
  0x4a   :  { %359 = vmatprep.mubr.bf16.mxu0 %v1991_v0  ;;  %400 = vmatprep.mubr.bf16.mxu1 %v1991_v0  ;;  %v1637_v2 = vld [vmem:[#allocation5 + $0xc] ss:$16 sps:$4 sm:$0xff]   ;;  %v1639_v3 = vld [vmem:[#allocation5] ss:$16 sps:$4 sm:$0xff]   ;;  %v1640_v4 = vld [vmem:[#allocation5 + $0x8] ss:$16 sps:$4 sm:$0xff]  }
  0x4b   :  { %327 = vmatprep.subr.bf16.mxu0 %v1635_v1  ;;  %368 = vmatprep.subr.bf16.mxu1 %v1637_v2  ;;  %v1641_v5 = vld [vmem:[#allocation5 + $0x24] ss:$16 sps:$4 sm:$0xff]   ;;  %v1643_v6 = vld [vmem:[#allocation5 + $0x2c] ss:$16 sps:$4 sm:$0xff]   ;;  %v1645_v7 = vld [vmem:[#allocation5 + $0x20] ss:$16 sps:$4 sm:$0xff]  }
  0x4c   :  { %328 = vmatpush1.bf16.msra.mxu0 %v1639_v3  ;;  %369 = vmatpush1.bf16.msra.mxu1 %v1640_v4  ;;  %v1646_v8 = vld [vmem:[#allocation5 + $0x28] ss:$16 sps:$4 sm:$0xff]   ;;  %v1647_v9 = vld [vmem:[#allocation5 + $0x44] ss:$16 sps:$4 sm:$0xff]   ;;  %v1649_v10 = vld [vmem:[#allocation5 + $0x4c] ss:$16 sps:$4 sm:$0xff]  }
  0x4d   :  { %329 = vmatprep.subr.bf16.mxu0 %v1641_v5  ;;  %370 = vmatprep.subr.bf16.mxu1 %v1643_v6  ;;  %v1651_v11 = vld [vmem:[#allocation5 + $0x40] ss:$16 sps:$4 sm:$0xff]   ;;  %v1652_v12 = vld [vmem:[#allocation5 + $0x48] ss:$16 sps:$4 sm:$0xff]   ;;  %v1653_v13 = vld [vmem:[#allocation5 + $0x64] ss:$16 sps:$4 sm:$0xff]  }
  0x4e   :  { %v1655_v14 = vld [vmem:[#allocation5 + $0x6c] ss:$16 sps:$4 sm:$0xff]   ;;  %v1657_v15 = vld [vmem:[#allocation5 + $0x60] ss:$16 sps:$4 sm:$0xff]   ;;  %v1658_v16 = vld [vmem:[#allocation5 + $0x68] ss:$16 sps:$4 sm:$0xff]  }
  0x4f   :  { %v1659_v17 = vld [vmem:[#allocation5 + $0x84] ss:$16 sps:$4 sm:$0xff]   ;;  %v1661_v18 = vld [vmem:[#allocation5 + $0x8c] ss:$16 sps:$4 sm:$0xff]   ;;  %v1663_v19 = vld [vmem:[#allocation5 + $0x80] ss:$16 sps:$4 sm:$0xff]  }
  0x50   :  { %330 = vmatpush1.bf16.msra.mxu0 %v1645_v7  ;;  %371 = vmatpush1.bf16.msra.mxu1 %v1646_v8  ;;  %v1664_v20 = vld [vmem:[#allocation5 + $0x88] ss:$16 sps:$4 sm:$0xff]   ;;  %v1665_v21 = vld [vmem:[#allocation5 + $0xa4] ss:$16 sps:$4 sm:$0xff]   ;;  %v1667_v22 = vld [vmem:[#allocation5 + $0xac] ss:$16 sps:$4 sm:$0xff]  }
  0x51   :  { %331 = vmatprep.subr.bf16.mxu0 %v1647_v9  ;;  %372 = vmatprep.subr.bf16.mxu1 %v1649_v10  ;;  %v1669_v23 = vld [vmem:[#allocation5 + $0xa0] ss:$16 sps:$4 sm:$0xff]   ;;  %v1670_v24 = vld [vmem:[#allocation5 + $0xa8] ss:$16 sps:$4 sm:$0xff]   ;;  %v1671_v25 = vld [vmem:[#allocation5 + $0xc4] ss:$16 sps:$4 sm:$0xff]  }
  0x52   :  { %v1673_v26 = vld [vmem:[#allocation5 + $0xcc] ss:$16 sps:$4 sm:$0xff]   ;;  %v1675_v27 = vld [vmem:[#allocation5 + $0xc0] ss:$16 sps:$4 sm:$0xff]   ;;  %v1676_v28 = vld [vmem:[#allocation5 + $0xc8] ss:$16 sps:$4 sm:$0xff]  }
  0x53   :  { %v1677_v29 = vld [vmem:[#allocation5 + $0xe4] ss:$16 sps:$4 sm:$0xff]   ;;  %v1679_v30 = vld [vmem:[#allocation5 + $0xec] ss:$16 sps:$4 sm:$0xff]   ;;  %v1681_v31 = vld [vmem:[#allocation5 + $0xe0] ss:$16 sps:$4 sm:$0xff]  }
  0x54   :  { %332 = vmatpush1.bf16.msra.mxu0 %v1651_v11  ;;  %373 = vmatpush1.bf16.msra.mxu1 %v1652_v12  ;;  %v1682_v32 = vld [vmem:[#allocation5 + $0xe8] ss:$16 sps:$4 sm:$0xff]   ;;  %v100_v33 = vld [vmem:[%s2242_s1] sm:$0xff]  ;;  %v1688_v35 = vld [vmem:[#allocation2 + $0xc] ss:$16 sps:$4 sm:$0xff]   ;;  %s1994_s15 = smov [#allocation10]  }
  0x55   :  { %333 = vmatprep.subr.bf16.mxu0 %v1653_v13  ;;  %374 = vmatprep.subr.bf16.mxu1 %v1655_v14  ;;  %v1685_v34 = vld [vmem:[#allocation2 + $0x4] ss:$16 sps:$4 sm:$0xff]   ;;  %v134_v36 = vpack.c.bf16 %v100_v33, %v100_v33  ;;  %v1683_v37 = vld [vmem:[#allocation2] ss:$16 sps:$4 sm:$0xff]   ;;  %v1686_v38 = vld [vmem:[#allocation2 + $0x8] ss:$16 sps:$4 sm:$0xff]  }
  0x56   :  { %v1691_v39 = vld [vmem:[#allocation2 + $0x24] ss:$16 sps:$4 sm:$0xff]   ;;  %v1694_v40 = vld [vmem:[#allocation2 + $0x2c] ss:$16 sps:$4 sm:$0xff]   ;;  %v1689_v41 = vld [vmem:[#allocation2 + $0x20] ss:$16 sps:$4 sm:$0xff]  }
  0x57   :  { %v1692_v42 = vld [vmem:[#allocation2 + $0x28] ss:$16 sps:$4 sm:$0xff]   ;;  %v1697_v43 = vld [vmem:[#allocation2 + $0x44] ss:$16 sps:$4 sm:$0xff]   ;;  %v1700_v44 = vld [vmem:[#allocation2 + $0x4c] ss:$16 sps:$4 sm:$0xff]  }
  0x58   :  { %334 = vmatpush1.bf16.msra.mxu0 %v1657_v15  ;;  %375 = vmatpush1.bf16.msra.mxu1 %v1658_v16  ;;  %v1695_v45 = vld [vmem:[#allocation2 + $0x40] ss:$16 sps:$4 sm:$0xff]   ;;  %v1698_v46 = vld [vmem:[#allocation2 + $0x48] ss:$16 sps:$4 sm:$0xff]   ;;  %v1703_v47 = vld [vmem:[#allocation2 + $0x64] ss:$16 sps:$4 sm:$0xff]  }
  0x59   :  { %335 = vmatprep.subr.bf16.mxu0 %v1659_v17  ;;  %376 = vmatprep.subr.bf16.mxu1 %v1661_v18  ;;  %v1706_v48 = vld [vmem:[#allocation2 + $0x6c] ss:$16 sps:$4 sm:$0xff]   ;;  %v1701_v49 = vld [vmem:[#allocation2 + $0x60] ss:$16 sps:$4 sm:$0xff]   ;;  %v1704_v50 = vld [vmem:[#allocation2 + $0x68] ss:$16 sps:$4 sm:$0xff]  }
  0x5a   :  { %v1709_v51 = vld [vmem:[#allocation2 + $0x84] ss:$16 sps:$4 sm:$0xff]   ;;  %v1712_v52 = vld [vmem:[#allocation2 + $0x8c] ss:$16 sps:$4 sm:$0xff]   ;;  %v1707_v53 = vld [vmem:[#allocation2 + $0x80] ss:$16 sps:$4 sm:$0xff]  }
  0x5b   :  { %v1710_v54 = vld [vmem:[#allocation2 + $0x88] ss:$16 sps:$4 sm:$0xff]   ;;  %v1715_v55 = vld [vmem:[#allocation2 + $0xa4] ss:$16 sps:$4 sm:$0xff]   ;;  %v1718_v56 = vld [vmem:[#allocation2 + $0xac] ss:$16 sps:$4 sm:$0xff]  }
  0x5c   :  { %336 = vmatpush1.bf16.msra.mxu0 %v1663_v19  ;;  %377 = vmatpush1.bf16.msra.mxu1 %v1664_v20  ;;  %v1713_v57 = vld [vmem:[#allocation2 + $0xa0] ss:$16 sps:$4 sm:$0xff]   ;;  %v1716_v58 = vld [vmem:[#allocation2 + $0xa8] ss:$16 sps:$4 sm:$0xff]   ;;  %v1721_v59 = vld [vmem:[#allocation2 + $0xc4] ss:$16 sps:$4 sm:$0xff]  }
  0x5d   :  { %337 = vmatprep.subr.bf16.mxu0 %v1665_v21  ;;  %378 = vmatprep.subr.bf16.mxu1 %v1667_v22  ;;  %v1724_v60 = vld [vmem:[#allocation2 + $0xcc] ss:$16 sps:$4 sm:$0xff]   ;;  %v1719_v61 = vld [vmem:[#allocation2 + $0xc0] ss:$16 sps:$4 sm:$0xff]   ;;  %v1722_v62 = vld [vmem:[#allocation2 + $0xc8] ss:$16 sps:$4 sm:$0xff]  }
  0x5e   :  { %v1727_v63 = vld [vmem:[#allocation2 + $0xe4] ss:$16 sps:$4 sm:$0xff]   ;;  %v1730_v1 = vld [vmem:[#allocation2 + $0xec] ss:$16 sps:$4 sm:$0xff]   ;;  %v1725_v2 = vld [vmem:[#allocation2 + $0xe0] ss:$16 sps:$4 sm:$0xff]  }
  0x5f   :  { %v1728_v3 = vld [vmem:[#allocation2 + $0xe8] ss:$16 sps:$4 sm:$0xff]   ;;  %v98_v4 = vld [vmem:[%s2241_s0] sm:$0xff]  ;;  %v1736_v9 = vld [vmem:[#allocation8 + $0xc] ss:$16 sps:$4 sm:$0xff]   ;;  %s1430_s16 = sshll.u32 %s1994_s15, 4  ;;  %s1431_s16 = int_to_ptr.vmem [resolvable:$true] %s1430_s16 }
  0x60   :  { %338 = vmatpush1.bf16.msra.mxu0 %v1669_v23  ;;  %379 = vmatpush1.bf16.msra.mxu1 %v1670_v24  ;;  %v99_v5 = vpack.c.bf16 %v98_v4, %v98_v4  ;;  %v1731_v6 = vld [vmem:[#allocation8] ss:$16 sps:$4 sm:$0xff]   ;;  %v1733_v7 = vld [vmem:[#allocation8 + $0x4] ss:$16 sps:$4 sm:$0xff]   ;;  %v1734_v8 = vld [vmem:[#allocation8 + $0x8] ss:$16 sps:$4 sm:$0xff]   ;;  %p1960_p5 = scmp.lt.s32.totalorder %s1431_s16, %s1431_s16 }
  0x61   :  { %339 = vmatprep.subr.bf16.mxu0 %v1671_v25  ;;  %380 = vmatprep.subr.bf16.mxu1 %v1673_v26  ;;  %v1739_v10 = vld [vmem:[#allocation8 + $0x24] ss:$16 sps:$4 sm:$0xff]   ;;  %v1742_v11 = vld [vmem:[#allocation8 + $0x2c] ss:$16 sps:$4 sm:$0xff]   ;;  %v1737_v12 = vld [vmem:[#allocation8 + $0x20] ss:$16 sps:$4 sm:$0xff]  }
  0x62   :  { %v1740_v13 = vld [vmem:[#allocation8 + $0x28] ss:$16 sps:$4 sm:$0xff]   ;;  %v1745_v14 = vld [vmem:[#allocation8 + $0x44] ss:$16 sps:$4 sm:$0xff]   ;;  %v1748_v15 = vld [vmem:[#allocation8 + $0x4c] ss:$16 sps:$4 sm:$0xff]  }
  0x63   :  { %v1743_v16 = vld [vmem:[#allocation8 + $0x40] ss:$16 sps:$4 sm:$0xff]   ;;  %v1746_v17 = vld [vmem:[#allocation8 + $0x48] ss:$16 sps:$4 sm:$0xff]   ;;  %v1751_v18 = vld [vmem:[#allocation8 + $0x64] ss:$16 sps:$4 sm:$0xff]  }
  0x64   :  { %340 = vmatpush1.bf16.msra.mxu0 %v1675_v27  ;;  %381 = vmatpush1.bf16.msra.mxu1 %v1676_v28  ;;  %v1754_v19 = vld [vmem:[#allocation8 + $0x6c] ss:$16 sps:$4 sm:$0xff]   ;;  %v1749_v20 = vld [vmem:[#allocation8 + $0x60] ss:$16 sps:$4 sm:$0xff]   ;;  %v1752_v21 = vld [vmem:[#allocation8 + $0x68] ss:$16 sps:$4 sm:$0xff]  }
  0x65   :  { %341 = vmatprep.subr.bf16.mxu0 %v1677_v29  ;;  %382 = vmatprep.subr.bf16.mxu1 %v1679_v30  ;;  %v1757_v22 = vld [vmem:[#allocation8 + $0x84] ss:$16 sps:$4 sm:$0xff]   ;;  %v1755_v23 = vld [vmem:[#allocation8 + $0x80] ss:$16 sps:$4 sm:$0xff]   ;;  %v1760_v24 = vld [vmem:[#allocation8 + $0x8c] ss:$16 sps:$4 sm:$0xff]  }
  0x66   :  { %v1758_v25 = vld [vmem:[#allocation8 + $0x88] ss:$16 sps:$4 sm:$0xff]   ;;  %v1763_v26 = vld [vmem:[#allocation8 + $0xa4] ss:$16 sps:$4 sm:$0xff]   ;;  %v1761_v27 = vld [vmem:[#allocation8 + $0xa0] ss:$16 sps:$4 sm:$0xff]  }
  0x67   :  { %v1766_v28 = vld [vmem:[#allocation8 + $0xac] ss:$16 sps:$4 sm:$0xff]   ;;  %v1764_v29 = vld [vmem:[#allocation8 + $0xa8] ss:$16 sps:$4 sm:$0xff]   ;;  %v1769_v30 = vld [vmem:[#allocation8 + $0xc4] ss:$16 sps:$4 sm:$0xff]  }
  0x68   :  { %342 = vmatpush1.bf16.msra.mxu0 %v1681_v31  ;;  %383 = vmatpush1.bf16.msra.mxu1 %v1682_v32  ;;  %v1767_v31 = vld [vmem:[#allocation8 + $0xc0] ss:$16 sps:$4 sm:$0xff]   ;;  %v1772_v32 = vld [vmem:[#allocation8 + $0xcc] ss:$16 sps:$4 sm:$0xff]   ;;  %v1770_v33 = vld [vmem:[#allocation8 + $0xc8] ss:$16 sps:$4 sm:$0xff]  }
  0x69   :  { %569 = vmatprep.subr.bf16.mxu0 %v1685_v34  ;;  %610 = vmatprep.subr.bf16.mxu1 %v1688_v35  ;;  %v1775_v34 = vld [vmem:[#allocation8 + $0xe4] ss:$16 sps:$4 sm:$0xff]   ;;  %v1773_v35 = vld [vmem:[#allocation8 + $0xe0] ss:$16 sps:$4 sm:$0xff]  }
  0x6a   :  { %v1823_v4 = vld [vmem:[#allocation7 + $0xe4] ss:$16 sps:$4 sm:$0xff]  }
  0x6b   :  { %360 = vmatmul.mubr.bf16.vlgmr.msra.gmra.mrb[0].mxu0 %v134_v36  ;;  %401 = vmatmul.mubr.bf16.vlgmr.msra.gmra.mrb[0].mxu1 %v134_v36  ;;  %v1778_v36 = vld [vmem:[#allocation8 + $0xec] ss:$16 sps:$4 sm:$0xff]  }
  0x6c   :  { %570 = vmatpush1.bf16.msra.mxu0 %v1683_v37  ;;  %611 = vmatpush1.bf16.msra.mxu1 %v1686_v38  ;;  %v1776_v37 = vld [vmem:[#allocation8 + $0xe8] ss:$16 sps:$4 sm:$0xff]  }
  0x6d   :  { %571 = vmatprep.subr.bf16.mxu0 %v1691_v39  ;;  %612 = vmatprep.subr.bf16.mxu1 %v1694_v40  ;;  %v1516_v38 = vld [vmem:[%s2242_s1 + $0x8] sm:$0xff]  ;;  %v1781_v40 = vld [vmem:[#allocation7 + $0x4] ss:$16 sps:$4 sm:$0xff]  }
  0x6e   :  { %601 = vmatprep.mubr.bf16.mxu0 %v1991_v0  ;;  %642 = vmatprep.mubr.bf16.mxu1 %v1991_v0  ;;  %v740_v39 = vpack.c.bf16 %v1516_v38, %v1516_v38 }
  0x70   :  { %572 = vmatpush1.bf16.msra.mxu0 %v1689_v41  ;;  %613 = vmatpush1.bf16.msra.mxu1 %v1692_v42  ;;  %v1784_v41 = vld [vmem:[#allocation7 + $0xc] ss:$16 sps:$4 sm:$0xff]   ;;  %v1779_v42 = vld [vmem:[#allocation7] ss:$16 sps:$4 sm:$0xff]  }
  0x71   :  { %573 = vmatprep.subr.bf16.mxu0 %v1697_v43  ;;  %614 = vmatprep.subr.bf16.mxu1 %v1700_v44  ;;  %v1782_v43 = vld [vmem:[#allocation7 + $0x8] ss:$16 sps:$4 sm:$0xff]   ;;  %v1787_v44 = vld [vmem:[#allocation7 + $0x24] ss:$16 sps:$4 sm:$0xff]  }
  0x74   :  { %574 = vmatpush1.bf16.msra.mxu0 %v1695_v45  ;;  %615 = vmatpush1.bf16.msra.mxu1 %v1698_v46  ;;  %v1790_v45 = vld [vmem:[#allocation7 + $0x2c] ss:$16 sps:$4 sm:$0xff]   ;;  %v1785_v46 = vld [vmem:[#allocation7 + $0x20] ss:$16 sps:$4 sm:$0xff]  }
  0x75   :  { %575 = vmatprep.subr.bf16.mxu0 %v1703_v47  ;;  %616 = vmatprep.subr.bf16.mxu1 %v1706_v48  ;;  %v1788_v47 = vld [vmem:[#allocation7 + $0x28] ss:$16 sps:$4 sm:$0xff]   ;;  %v1793_v48 = vld [vmem:[#allocation7 + $0x44] ss:$16 sps:$4 sm:$0xff]  }
  0x78   :  { %576 = vmatpush1.bf16.msra.mxu0 %v1701_v49  ;;  %617 = vmatpush1.bf16.msra.mxu1 %v1704_v50  ;;  %v1796_v49 = vld [vmem:[#allocation7 + $0x4c] ss:$16 sps:$4 sm:$0xff]   ;;  %v1791_v50 = vld [vmem:[#allocation7 + $0x40] ss:$16 sps:$4 sm:$0xff]  }
  0x79   :  { %577 = vmatprep.subr.bf16.mxu0 %v1709_v51  ;;  %618 = vmatprep.subr.bf16.mxu1 %v1712_v52  ;;  %v1794_v51 = vld [vmem:[#allocation7 + $0x48] ss:$16 sps:$4 sm:$0xff]   ;;  %v1799_v52 = vld [vmem:[#allocation7 + $0x64] ss:$16 sps:$4 sm:$0xff]  }
  0x7c   :  { %578 = vmatpush1.bf16.msra.mxu0 %v1707_v53  ;;  %619 = vmatpush1.bf16.msra.mxu1 %v1710_v54  ;;  %v1802_v53 = vld [vmem:[#allocation7 + $0x6c] ss:$16 sps:$4 sm:$0xff]   ;;  %v1797_v54 = vld [vmem:[#allocation7 + $0x60] ss:$16 sps:$4 sm:$0xff]  }
  0x7d   :  { %579 = vmatprep.subr.bf16.mxu0 %v1715_v55  ;;  %620 = vmatprep.subr.bf16.mxu1 %v1718_v56  ;;  %v1800_v55 = vld [vmem:[#allocation7 + $0x68] ss:$16 sps:$4 sm:$0xff]   ;;  %v1808_v56 = vld [vmem:[#allocation7 + $0x8c] ss:$16 sps:$4 sm:$0xff]  }
  0x80   :  { %580 = vmatpush1.bf16.msra.mxu0 %v1713_v57  ;;  %621 = vmatpush1.bf16.msra.mxu1 %v1716_v58  ;;  %v1803_v57 = vld [vmem:[#allocation7 + $0x80] ss:$16 sps:$4 sm:$0xff]   ;;  %v1806_v58 = vld [vmem:[#allocation7 + $0x88] ss:$16 sps:$4 sm:$0xff]  }
  0x81   :  { %581 = vmatprep.subr.bf16.mxu0 %v1721_v59  ;;  %622 = vmatprep.subr.bf16.mxu1 %v1724_v60  ;;  %v1809_v59 = vld [vmem:[#allocation7 + $0xa0] ss:$16 sps:$4 sm:$0xff]   ;;  %v1811_v60 = vld [vmem:[#allocation7 + $0xa4] ss:$16 sps:$4 sm:$0xff]  }
  0x84   :  { %582 = vmatpush1.bf16.msra.mxu0 %v1719_v61  ;;  %623 = vmatpush1.bf16.msra.mxu1 %v1722_v62  ;;  %v1812_v61 = vld [vmem:[#allocation7 + $0xa8] ss:$16 sps:$4 sm:$0xff]   ;;  %v1814_v62 = vld [vmem:[#allocation7 + $0xac] ss:$16 sps:$4 sm:$0xff]  }
  0x85   :  { %583 = vmatprep.subr.bf16.mxu0 %v1727_v63  ;;  %624 = vmatprep.subr.bf16.mxu1 %v1730_v1  ;;  %v1817_v63 = vld [vmem:[#allocation7 + $0xc4] ss:$16 sps:$4 sm:$0xff]   ;;  %v1820_v1 = vld [vmem:[#allocation7 + $0xcc] ss:$16 sps:$4 sm:$0xff]  }
  0x88   :  { %584 = vmatpush1.bf16.msra.mxu0 %v1725_v2  ;;  %625 = vmatpush1.bf16.msra.mxu1 %v1728_v3  ;;  %v1815_v2 = vld [vmem:[#allocation7 + $0xc0] ss:$16 sps:$4 sm:$0xff]   ;;  %v1818_v3 = vld [vmem:[#allocation7 + $0xc8] ss:$16 sps:$4 sm:$0xff]  }
  0x89   :  { %933 = vmatprep.subr.bf16.mxu0 %v1733_v7  ;;  %974 = vmatprep.subr.bf16.mxu1 %v1736_v9  ;;  %v1824_v7 = vld [vmem:[#allocation7 + $0xe8] ss:$16 sps:$4 sm:$0xff]  }
  0x8b   :  { %602 = vmatmul.mubr.bf16.vlgmr.msra.gmra.mrb[4].mxu0 %v99_v5  ;;  %643 = vmatmul.mubr.bf16.vlgmr.msra.gmra.mrb[4].mxu1 %v99_v5  ;;  %v1826_v5 = vld [vmem:[#allocation7 + $0xec] ss:$16 sps:$4 sm:$0xff]  }
  0x8c   :  { %965 = vmatprep.mubr.bf16.mxu0 %v1991_v0  ;;  %1006 = vmatprep.mubr.bf16.mxu1 %v1991_v0 }
  0x8d   :  { %934 = vmatpush1.bf16.msra.mxu0 %v1731_v6  ;;  %975 = vmatpush1.bf16.msra.mxu1 %v1734_v8  ;;  %v1821_v6 = vld [vmem:[#allocation7 + $0xe0] ss:$16 sps:$4 sm:$0xff]  }
  0x8e   :  { %935 = vmatprep.subr.bf16.mxu0 %v1739_v10  ;;  %976 = vmatprep.subr.bf16.mxu1 %v1742_v11 }
  0x91   :  { %936 = vmatpush1.bf16.msra.mxu0 %v1737_v12  ;;  %977 = vmatpush1.bf16.msra.mxu1 %v1740_v13 }
  0x92   :  { %937 = vmatprep.subr.bf16.mxu0 %v1745_v14  ;;  %978 = vmatprep.subr.bf16.mxu1 %v1748_v15 }
  0x95   :  { %938 = vmatpush1.bf16.msra.mxu0 %v1743_v16  ;;  %979 = vmatpush1.bf16.msra.mxu1 %v1746_v17  ;;  %v653_v16 = vlaneseq }
  0x96   :  { %939 = vmatprep.subr.bf16.mxu0 %v1751_v18  ;;  %980 = vmatprep.subr.bf16.mxu1 %v1754_v19  ;;  %v651_v19 = vld [vmem:[%s2246_s5] sm:$0xf] }
  0x97   :  { %v2156_v17 = vshrl.u32 %v653_v16, 7  ;;  %v1257_v16 = vld [vmem:[%s2249_s8] sm:$0xf] }
  0x99   :  { %940 = vmatpush1.bf16.msra.mxu0 %v1749_v20  ;;  %981 = vmatpush1.bf16.msra.mxu1 %v1752_v21  ;;  %v655_v18 = vsub.s32 0, %v2156_v17  ;;  %v659_v20 = vsub.s32 1, %v2156_v17 }
  0x9a   :  { %941 = vmatprep.subr.bf16.mxu0 %v1757_v22  ;;  %982 = vmatprep.subr.bf16.mxu1 %v1760_v24 }
  0x9b   :  { %v656_v21 = vrot.slane %v651_v19, %v655_v18  ;;  %v660_v24 = vrot.slane %v651_v19, %v659_v20 }
  0x9d   :  { %942 = vmatpush1.bf16.msra.mxu0 %v1755_v23  ;;  %983 = vmatpush1.bf16.msra.mxu1 %v1758_v25 }
  0x9e   :  { %943 = vmatprep.subr.bf16.mxu0 %v1763_v26  ;;  %984 = vmatprep.subr.bf16.mxu1 %v1766_v28 }
  0xa1   :  { %944 = vmatpush1.bf16.msra.mxu0 %v1761_v27  ;;  %985 = vmatpush1.bf16.msra.mxu1 %v1764_v29 }
  0xa2   :  { %945 = vmatprep.subr.bf16.mxu0 %v1769_v30  ;;  %986 = vmatprep.subr.bf16.mxu1 %v1772_v32 }
  0xa5   :  { %946 = vmatpush1.bf16.msra.mxu0 %v1767_v31  ;;  %987 = vmatpush1.bf16.msra.mxu1 %v1770_v33 }
  0xa6   :  { %947 = vmatprep.subr.bf16.mxu0 %v1775_v34  ;;  %988 = vmatprep.subr.bf16.mxu1 %v1778_v36  ;;  %v663_v34 = vsub.s32 2, %v2156_v17 }
  0xa9   :  { %948 = vmatpush1.bf16.msra.mxu0 %v1773_v35  ;;  %989 = vmatpush1.bf16.msra.mxu1 %v1776_v37 }
  0xaa   :  { %1175 = vmatprep.subr.bf16.mxu0 %v1781_v40  ;;  %1216 = vmatprep.subr.bf16.mxu1 %v1784_v41  ;;  %v667_v40 = vsub.s32 3, %v2156_v17  ;;  %v664_v41 = vrot.slane %v651_v19, %v663_v34 }
  0xac   :  { %966 = vmatmul.mubr.bf16.vlgmr.msra.gmra.mrb[8].mxu0 %v740_v39  ;;  %1007 = vmatmul.mubr.bf16.vlgmr.msra.gmra.mrb[8].mxu1 %v740_v39 }
  0xad   :  { %1207 = vmatprep.mubr.bf16.mxu0 %v1991_v0  ;;  %1176 = vmatpush1.bf16.msra.mxu0 %v1779_v42  ;;  %v668_v42 = vrot.slane %v651_v19, %v667_v40  ;;  %v1262_v19 = vrot.slane %v1257_v16, %v655_v18  ;;  %v1270_v18 = vrot.slane %v1257_v16, %v663_v34 }
  0xae   :  { %1217 = vmatpush1.bf16.msra.mxu1 %v1782_v43  ;;  %1248 = vmatprep.mubr.bf16.mxu1 %v1991_v0  ;;  %v1805_v0 = vld [vmem:[#allocation7 + $0x84] ss:$16 sps:$4 sm:$0xff]  }
  0xaf   :  { %1177 = vmatprep.subr.bf16.mxu0 %v1787_v44  ;;  %1218 = vmatprep.subr.bf16.mxu1 %v1790_v45 }
  0xb1   :  { %1178 = vmatpush1.bf16.msra.mxu0 %v1785_v46 }
  0xb2   :  { %1219 = vmatpush1.bf16.msra.mxu1 %v1788_v47  ;;  %1179 = vmatprep.subr.bf16.mxu0 %v1793_v48 }
  0xb3   :  { %1220 = vmatprep.subr.bf16.mxu1 %v1796_v49 }
  0xb5   :  { %1180 = vmatpush1.bf16.msra.mxu0 %v1791_v50 }
  0xb6   :  { %1221 = vmatpush1.bf16.msra.mxu1 %v1794_v51  ;;  %1181 = vmatprep.subr.bf16.mxu0 %v1799_v52 }
  0xb7   :  { %1222 = vmatprep.subr.bf16.mxu1 %v1802_v53  ;;  %v101_v53 = vld [vmem:[%s2243_s2] sm:$0xff] }
  0xb9   :  { %1182 = vmatpush1.bf16.msra.mxu0 %v1797_v54 }
  0xba   :  { %1223 = vmatpush1.bf16.msra.mxu1 %v1800_v55  ;;  %1183 = vmatprep.subr.bf16.mxu0 %v1805_v0 }
  0xbb   :  { %1224 = vmatprep.subr.bf16.mxu1 %v1808_v56 }
  0xbd   :  { %1184 = vmatpush1.bf16.msra.mxu0 %v1803_v57 }
  0xbe   :  { %1225 = vmatpush1.bf16.msra.mxu1 %v1806_v58  ;;  %1185 = vmatprep.subr.bf16.mxu0 %v1811_v60 }
  0xbf   :  { %1226 = vmatprep.subr.bf16.mxu1 %v1814_v62 }
  0xc1   :  { %1186 = vmatpush1.bf16.msra.mxu0 %v1809_v59 }
  0xc2   :  { %1227 = vmatpush1.bf16.msra.mxu1 %v1812_v61  ;;  %1187 = vmatprep.subr.bf16.mxu0 %v1817_v63 }
  0xc3   :  { %1228 = vmatprep.subr.bf16.mxu1 %v1820_v1 }
  0xc5   :  { %1188 = vmatpush1.bf16.msra.mxu0 %v1815_v2 }
  0xc6   :  { %1229 = vmatpush1.bf16.msra.mxu1 %v1818_v3  ;;  %1189 = vmatprep.subr.bf16.mxu0 %v1823_v4 }
  0xc7   :  { %1230 = vmatprep.subr.bf16.mxu1 %v1826_v5 }
  0xc9   :  { %1190 = vmatpush1.bf16.msra.mxu0 %v1821_v6 }
  0xca   :  { %1231 = vmatpush1.bf16.msra.mxu1 %v1824_v7  ;;  %v1827_v7 = vld [vmem:[%s2250_s9] sm:$0xff]  }
 0x13e   :  { %v361_v8 = vpop.f32.mrb[0].mxu0  ;;  %v402_v9 = vpop.f32.mrb[0].mxu1 }
 0x13f   :  { %v363_v10 = vpop.f32.mrb[1].mxu0  ;;  %v404_v11 = vpop.f32.mrb[1].mxu1 }
 0x140   :  { %v365_v12 = vpop.f32.mrb[2].mxu0  ;;  %v406_v13 = vpop.f32.mrb[2].mxu1 }
 0x141   :  { %v366_v14 = vpop.f32.mrb[3].mxu0  ;;  %v407_v15 = vpop.f32.mrb[3].mxu1  ;;  %v1831_v12 = vld [vmem:[%s2250_s9 + $0x20] sm:$0xff]   ;;  %v1832_v13 = vld [vmem:[%s2250_s9 + $0x28] sm:$0xff]  }
 0x142   :  { %v1833_v14 = vld [vmem:[%s2250_s9 + $0x30] sm:$0xff]   ;;  %v1834_v15 = vld [vmem:[%s2250_s9 + $0x38] sm:$0xff]  }
 0x15e   :  { %v603_v22 = vpop.f32.mrb[4].mxu0  ;;  %v644_v23 = vpop.f32.mrb[4].mxu1 }
 0x15f   :  { %v604_v25 = vadd.f32 %v603_v22, %v361_v8  ;;  %v645_v26 = vadd.f32 %v644_v23, %v402_v9  ;;  %v605_v27 = vpop.f32.mrb[5].mxu0  ;;  %v646_v28 = vpop.f32.mrb[5].mxu1  ;;  %v1992_v8 = vmov 0.0   ;;  %v1828_v9 = vld [vmem:[%s2250_s9 + $0x8] sm:$0xff]   ;;  %v1266_v23 = vrot.slane %v1257_v16, %v659_v20 }
 0x160   :  { %v606_v29 = vadd.f32 %v605_v27, %v363_v10  ;;  %v647_v30 = vadd.f32 %v646_v28, %v404_v11  ;;  %v607_v31 = vpop.f32.mrb[6].mxu0  ;;  %v648_v32 = vpop.f32.mrb[6].mxu1  ;;  %1605 = vmatprep.subr.bf16.mxu0 %v1992_v8  ;;  %v1829_v10 = vld [vmem:[%s2250_s9 + $0x10] sm:$0xff]   ;;  %v1830_v11 = vld [vmem:[%s2250_s9 + $0x18] sm:$0xff]   ;;  %v1274_v20 = vrot.slane %v1257_v16, %v667_v40 }
 0x161   :  { %v673_v33 = vadd.f32 %v656_v21, %v604_v25  ;;  %v608_v35 = vpop.f32.mrb[7].mxu0  ;;  %v649_v36 = vpop.f32.mrb[7].mxu1  ;;  %v675_v43 = vadd.f32 %v664_v41, %v645_v26 }
 0x162   :  { %v674_v37 = vadd.f32 %v660_v24, %v606_v29  ;;  %v676_v44 = vadd.f32 %v668_v42, %v647_v30 }
 0x163   :  { %v1513_v38 = vmul.f32 -1.442695, %v673_v33  ;;  %v1515_v45 = vmul.f32 -1.442695, %v675_v43 }
 0x164   :  { %v1514_v39 = vmul.f32 -1.442695, %v674_v37 }
 0x165   :  { %1835 = vpow2.f32 %v1513_v38 }
 0x166   :  { %1837 = vpow2.f32 %v1514_v39 }
 0x167   :  { %1839 = vtanh.f32 %v676_v44 }
 0x168   :  { %1841 = vpow2.f32 %v1515_v45 }
 0x16f   :  { %v1836_v46 = vpop.eup %1835 }
 0x170   :  { %v686_v47 = vadd.f32 1.0, %v1836_v46  ;;  %v1838_v48 = vpop.eup %1837 }
 0x171   :  { %v687_v49 = vadd.f32 1.0, %v1838_v48  ;;  %v1840_v50 = vpop.eup %1839 }
 0x172   :  { %1843 = vrcp.f32 %v686_v47  ;;  %v1842_v51 = vpop.eup %1841 }
 0x173   :  { %1845 = vrcp.f32 %v687_v49  ;;  %v688_v0 = vadd.f32 1.0, %v1842_v51 }
 0x175   :  { %1847 = vrcp.f32 %v688_v0 }
 0x17c   :  { %v1844_v52 = vpop.eup %1843 }
 0x17d   :  { %v697_v54 = vmul.f32 %v1844_v52, %v1840_v50  ;;  %v1846_v55 = vpop.eup %1845 }
 0x17e   :  { %v696_v56 = vmul.f32 %v1846_v55, %v101_v53 }
 0x17f   :  { %v1848_v58 = vpop.eup %1847  ;;  %v967_v62 = vpop.f32.mrb[8].mxu0 }
 0x180   :  { %v698_v57 = vadd.f32 %v697_v54, %v696_v56  ;;  %v969_v63 = vpop.f32.mrb[9].mxu0  ;;  %v1008_v3 = vpop.f32.mrb[8].mxu1  ;;  %v1587_v56 = vld [vmem:[%s2251_s10] ss:$0 sm:$0xff] }
 0x181   :  { %v971_v1 = vpop.f32.mrb[10].mxu0  ;;  %v1010_v4 = vpop.f32.mrb[9].mxu1 }
 0x182   :  { %1849 = vtanh.f32 %v698_v57  ;;  %702 = vst [vmem:[%s2254_s13] sm:$0xff] %v698_v57  ;;  %v972_v2 = vpop.f32.mrb[11].mxu0  ;;  %v1012_v5 = vpop.f32.mrb[10].mxu1 }
 0x183   :  { %v1013_v6 = vpop.f32.mrb[11].mxu1 }
 0x189   :  { %v1517_v34 = vld [vmem:[%s2243_s2 + $0x8] sm:$0xff] }
 0x18c   :  { %v1850_v59 = vpop.eup %1849 }
 0x18d   :  { %v700_v60 = vmul.f32 %v1850_v59, %v1848_v58 }
 0x18f   :  { %701 = vst [vmem:[%s2253_s12] sm:$0xff] %v700_v60  ;;  %v703_v61 = vpack.c.bf16 %v700_v60, %v700_v60 }
 0x191   :  { %1208 = vmatmul.mubr.bf16.vlgmr.msra.gmra.mrb[12].mxu0 %v703_v61  ;;  %1249 = vmatmul.mubr.bf16.vlgmr.msra.gmra.mrb[12].mxu1 %v703_v61 }
 0x192   :  { %1606 = vmatpush3.bf16.msra.mxu0 %v1827_v7  ;;  %1621 = vmatprep.mubr.msk.bf16.mxu0 %vm1993_vm0, %v1992_v8 }
 0x193   :  { %1607 = vmatprep.subr.bf16.mxu0 %v1992_v8 }
 0x196   :  { %1608 = vmatpush3.bf16.msra.mxu0 %v1828_v9 }
 0x197   :  { %1609 = vmatprep.subr.bf16.mxu0 %v1992_v8 }
 0x19a   :  { %1610 = vmatpush3.bf16.msra.mxu0 %v1829_v10 }
 0x19b   :  { %1611 = vmatprep.subr.bf16.mxu0 %v1992_v8 }
 0x19e   :  { %1612 = vmatpush3.bf16.msra.mxu0 %v1830_v11 }
 0x19f   :  { %1613 = vmatprep.subr.bf16.mxu0 %v1992_v8 }
 0x1a2   :  { %1614 = vmatpush3.bf16.msra.mxu0 %v1831_v12 }
 0x1a3   :  { %1615 = vmatprep.subr.bf16.mxu0 %v1992_v8 }
 0x1a6   :  { %1616 = vmatpush3.bf16.msra.mxu0 %v1832_v13 }
 0x1a7   :  { %1617 = vmatprep.subr.bf16.mxu0 %v1992_v8 }
 0x1aa   :  { %1618 = vmatpush3.bf16.msra.mxu0 %v1833_v14 }
 0x1ab   :  { %1619 = vmatprep.subr.bf16.mxu0 %v1992_v8 }
 0x1ae   :  { %1620 = vmatpush3.bf16.msra.mxu0 %v1834_v15 }
 0x264   :  { %v1209_v21 = vpop.f32.mrb[12].mxu0  ;;  %v1250_v22 = vpop.f32.mrb[12].mxu1 }
 0x265   :  { %v1210_v24 = vadd.f32 %v1209_v21, %v967_v62  ;;  %v1251_v25 = vadd.f32 %v1250_v22, %v1008_v3  ;;  %v1211_v26 = vpop.f32.mrb[13].mxu0  ;;  %v1252_v27 = vpop.f32.mrb[13].mxu1 }
 0x266   :  { %v1212_v28 = vadd.f32 %v1211_v26, %v969_v63  ;;  %v1253_v29 = vadd.f32 %v1252_v27, %v1010_v4  ;;  %v1213_v30 = vpop.f32.mrb[14].mxu0  ;;  %v1254_v31 = vpop.f32.mrb[14].mxu1 }
 0x267   :  { %v1279_v32 = vadd.f32 %v1262_v19, %v1210_v24  ;;  %v1214_v33 = vpop.f32.mrb[15].mxu0  ;;  %v1255_v35 = vpop.f32.mrb[15].mxu1  ;;  %v1281_v39 = vadd.f32 %v1270_v18, %v1251_v25 }
 0x268   :  { %v1280_v36 = vadd.f32 %v1266_v23, %v1212_v28  ;;  %v1282_v41 = vadd.f32 %v1274_v20, %v1253_v29 }
 0x269   :  { %v1582_v37 = vmul.f32 -1.442695, %v1279_v32  ;;  %v1584_v42 = vmul.f32 -1.442695, %v1281_v39 }
 0x26a   :  { %v1583_v38 = vmul.f32 -1.442695, %v1280_v36 }
 0x26b   :  { %1851 = vpow2.f32 %v1582_v37 }
 0x26c   :  { %1853 = vpow2.f32 %v1583_v38 }
 0x26d   :  { %1855 = vtanh.f32 %v1282_v41 }
 0x26e   :  { %1857 = vpow2.f32 %v1584_v42 }
 0x275   :  { %v1852_v43 = vpop.eup %1851 }
 0x276   :  { %v1292_v44 = vadd.f32 1.0, %v1852_v43  ;;  %v1854_v45 = vpop.eup %1853 }
 0x277   :  { %v1293_v46 = vadd.f32 1.0, %v1854_v45  ;;  %v1856_v47 = vpop.eup %1855 }
 0x278   :  { %1859 = vrcp.f32 %v1292_v44  ;;  %v1858_v48 = vpop.eup %1857 }
 0x279   :  { %1861 = vrcp.f32 %v1293_v46  ;;  %v1294_v50 = vadd.f32 1.0, %v1858_v48 }
 0x27b   :  { %1863 = vrcp.f32 %v1294_v50 }
 0x282   :  { %v1860_v49 = vpop.eup %1859 }
 0x283   :  { %v1303_v17 = vmul.f32 %v1860_v49, %v1856_v47  ;;  %v1862_v40 = vpop.eup %1861 }
 0x284   :  { %v1302_v51 = vmul.f32 %v1862_v40, %v1517_v34 }
 0x285   :  { %v1864_v53 = vpop.eup %1863 }
 0x286   :  { %v1304_v52 = vadd.f32 %v1303_v17, %v1302_v51 }
 0x288   :  { %1865 = vtanh.f32 %v1304_v52  ;;  %1586 = vst [vmem:[%s2254_s13 + $0x8] sm:$0xff] %v1304_v52  ;;  %s1955_s13 = scalar_lea.vmem %s1431_s16, 128 }
 0x289   :  { %p1956_p4 = scmp.ne.s32.totalorder %s1431_s16, %s1955_s13  ;;  %p1961_p6 = scmp.lt.s32.totalorder %s1955_s13, %s1955_s13 }
 0x28b   :  { %p1962_p7 = por %p1961_p6, %p1960_p5 }
 0x28d   :  { %p1963_p8 = pnand %p1962_p7, %p1956_p4 }
 0x292   :  { %v1866_v54 = vpop.eup %1865 }
 0x293   :  { %v1306_v55 = vmul.f32 %v1866_v54, %v1864_v53 }
 0x295   :  { %1585 = vst [vmem:[%s2253_s12 + $0x8] sm:$0xff] %v1306_v55  ;;  %v1311_v0 = vpack.c.bf16 %v1306_v55, %v1306_v55 }
 0x297   :  { %1622 = vmatmul.mubr.bf16.vlgmr.msra.gmra.mrb[16].mxu0 %v1311_v0 }
 0x36a   :  { %v1417_v57 = vpop.f32.mrb[16].mxu0 }
 0x36b   :  { %v1418_v58 = vadd.f32 %v1587_v56, %v1417_v57  ;;  %v1623_v59 = vpop.f32.mrb[17].mxu0 }
 0x36c   :  { %v1420_v60 = vpop.f32.mrb[18].mxu0 }
 0x36d   :  { %1423 = vst [vmem:[#allocation10] sm:$0xff] %v1418_v58  ;;  %v1624_v61 = vpop.f32.mrb[19].mxu0 }
 0x36e   :  { %1966 = shalt.err (!%p1963_p8)
}
 0x36f   :  { %s1967_s10 = scalar_lea.hbm %s2252_s11, 128 }
 0x370   :  { %p1968_p9 = scmp.ne.s32.totalorder %s2252_s11, %s1967_s10  ;;  %p1971_p10 = scmp.lt.u32.totalorder %s1967_s10, %s2252_s11 }
 0x372   :  { %p1973_p11 = pnand %p1971_p10, %p1968_p9 }
 0x374   :  { %1976 = shalt.err (!%p1973_p11)
}
 0x375   :  { %1433 = dma.vmem_to_hbm [thread:$0]  %s1431_s16, 128, %s2252_s11, [#allocation4]  }
 0x376   :  { %1983 = dma.done.wait [#allocation4], 128  }
 0x377   :  { %1984 = vsyncadd [#allocation4], 4294967168 }
 0x378   :  { %1445 = vsyncpa [#allocation3], 1 }
 0x379   :  { %1446 = vsyncpa [#allocation6], 1 }
 0x37a   :  { %1447 = vsyncpa [#allocation9], 1 }
 0x37b   :  { %1448 = vsyncpa [#allocation4], 1 }

</bundles_post_ra>
